<compile_context>
chip_gen: v6e
topology: v6e:2x2x1
jax: 0.10.0
libtpu: 0.0.40
codegen_flags: <defaults>
</compile_context>

<pallas_src>
import math
import functools

import jax
import jax.numpy as jnp
from jax.experimental import pallas as pl
from jax.experimental.pallas import tpu as pltpu


_LANE = 128
_SUBLANE = 8


def _round_up(x, m):
    return ((x + m - 1) // m) * m


def _vmem_capacity_bytes():
    # Per-generation physical VMEM (v5e/v6e: 128 MiB, v7x: 64 MiB).  Fall back
    # to the smallest (v7x) so sizing never over-commits on an unknown chip.
    try:
        info = pltpu.get_tpu_info()
        cap = getattr(info, "vmem_capacity_bytes", None)
        if cap:
            return int(cap)
    except Exception:
        pass
    return 64 * 1024 * 1024


def _block_bytes(bb, n, d_in, dim_k, dim_v, d_kv, out_itemsize):
    """Rough per-grid-step VMEM footprint for a batch block of size bb."""
    rows = bb * n
    act = 2 * rows * d_in * 2                    # ctrs + feats blocks (bf16)
    out = rows * dim_v * out_itemsize            # output block
    pipelined = 2 * (act + out)                  # double-buffered by pipeline
    weights = 2 * d_in * (dim_k + d_kv) * 2      # bf16 weights (worst case 2x)
    interm = (rows * dim_k + rows * d_kv + rows * dim_v) * 4 \
        + 2 * bb * n * n * 4                     # q/kv/att + energy & p (f32)
    return pipelined + weights + interm


def _pick_block_b(B, n, d_in, dim_k, dim_v, d_kv, out_itemsize, vmem_limit):
    """Largest divisor of B that fits the VMEM budget; keep grid >= 2 when
    B >= 2 so both v7x TensorCores get work (1-TC chips are unaffected)."""
    budget = vmem_limit // 2                     # headroom for compiler scratch
    cap = max(1, B // 2) if B >= 2 else 1
    for bb in range(cap, 0, -1):
        if B % bb == 0 and _block_bytes(bb, n, d_in, dim_k, dim_v, d_kv,
                                        out_itemsize) <= budget:
            return bb
    return 1


def _attention_kernel(ctrs_ref, feats_ref, wq_ref, wkv_ref, o_ref,
                      *, block_b, n_nodes, dim_k, dim_v):
    # Per grid step:
    #   ctrs_ref / feats_ref : (Bb*N, D_in)       bf16 activations (flat rows)
    #   wq_ref               : (D_in, dim_k)      bf16, 1/sqrt(dim_k) folded in
    #   wkv_ref              : (D_in, d_kv)       bf16, K|V fused, padded once
    #   o_ref                : (Bb*N, dim_v)      unpadded lane-dense output
    # Projections on flattened rows so the MXU sees Bb*N rows per pass.
    q_flat = jnp.dot(ctrs_ref[...], wq_ref[...],
                     preferred_element_type=jnp.float32)        # (Bb*N, dim_k)
    kv_flat = jnp.dot(feats_ref[...], wkv_ref[...],
                      preferred_element_type=jnp.float32)       # (Bb*N, d_kv)

    # N % 8 == 0 -> these splits of the leading (sublane) axis are layout-free.
    q = q_flat.reshape(block_b, n_nodes, dim_k).astype(jnp.bfloat16)
    k = kv_flat[:, :dim_k].reshape(block_b, n_nodes, dim_k).astype(jnp.bfloat16)
    v = kv_flat[:, dim_k:dim_k + dim_v].reshape(
        block_b, n_nodes, dim_v).astype(jnp.bfloat16)

    # Batched QK^T: contract on the feature axis directly (no explicit k.T).
    # The 1/sqrt(dim_k) scale is already baked into wq.
    energy = jnp.einsum("bqe,bke->bqk", q, k,
                        preferred_element_type=jnp.float32)     # (Bb, N, N)

    # Max-stabilized softmax; exact f32 denominator division for accuracy.
    m = jnp.max(energy, axis=-1, keepdims=True)
    p = jnp.exp(energy - m)
    denom = jnp.sum(p, axis=-1, keepdims=True)

    att = jnp.einsum("bqk,bke->bqe", p.astype(jnp.bfloat16), v,
                     preferred_element_type=jnp.float32)        # (Bb, N, dim_v)
    att = att / denom

    o_ref[...] = att.reshape(block_b * n_nodes, dim_v).astype(o_ref.dtype)


def sparse_lane_attention(ctrs, feats, w_q, w_k, w_v, *, block_b=None):
    """Fused l_q/l_k/l_v projections + scaled dot-product attention.

    ctrs, feats : [B, N, dim_in]   (graph['ctrs'], graph['feats'])
    w_q, w_k    : [dim_in, dim_k]  pre-transposed Linear weights (x @ W)
    w_v         : [dim_in, dim_v]
    returns     : [B, N, dim_v]
    """
    B, N, D_in = ctrs.shape
    dim_k = w_q.shape[1]
    dim_v = w_v.shape[1]
    assert N % _SUBLANE == 0, "node count must be a sublane (8) multiple"
    norm_factor = 1.0 / math.sqrt(dim_k)

    # One-time weight prep (wrapper side): fold the softmax scale into w_q,
    # fuse K|V and pad the fused width once to a lane multiple, cast to bf16.
    wq_p = (w_q * norm_factor).astype(jnp.bfloat16)
    d_kv = _round_up(dim_k + dim_v, _LANE)
    wkv = jnp.concatenate([w_k, w_v], axis=1)
    if d_kv != dim_k + dim_v:
        wkv = jnp.pad(wkv, ((0, 0), (0, d_kv - (dim_k + dim_v))))
    wkv_p = wkv.astype(jnp.bfloat16)

    # bf16 + row-flattened activations (flatten here is free metadata).
    ctrs_f = ctrs.reshape(B * N, D_in).astype(jnp.bfloat16)
    feats_f = feats.reshape(B * N, D_in).astype(jnp.bfloat16)

    out_dtype = ctrs.dtype
    out_itemsize = jnp.dtype(out_dtype).itemsize

    vmem_cap = _vmem_capacity_bytes()
    vmem_limit = (vmem_cap * 3) // 4       # 96 MiB on v5e/v6e, 48 MiB on v7x

    if block_b is None:
        block_b = _pick_block_b(B, N, D_in, dim_k, dim_v, d_kv,
                                out_itemsize, vmem_limit)
    assert B % block_b == 0, "block_b must divide the batch"
    grid_b = B // block_b
    rows_blk = block_b * N

    kernel = functools.partial(_attention_kernel, block_b=block_b,
                               n_nodes=N, dim_k=dim_k, dim_v=dim_v)

    out = pl.pallas_call(
        kernel,
        out_shape=jax.ShapeDtypeStruct((B * N, dim_v), out_dtype),
        grid_spec=pltpu.PrefetchScalarGridSpec(
            num_scalar_prefetch=0,
            grid=(grid_b,),
            in_specs=[
                pl.BlockSpec((rows_blk, D_in), lambda b: (b, 0)),
                pl.BlockSpec((rows_blk, D_in), lambda b: (b, 0)),
                # Weights are grid-invariant (constant index_map); small, so
                # default double-buffering costs little VMEM.
                pl.BlockSpec((D_in, dim_k), lambda b: (0, 0)),
                pl.BlockSpec((D_in, d_kv), lambda b: (0, 0)),
            ],
            out_specs=pl.BlockSpec((rows_blk, dim_v), lambda b: (b, 0)),
        ),
        compiler_params=pltpu.CompilerParams(
            dimension_semantics=("parallel",),
            vmem_limit_bytes=int(vmem_limit),
        ),
    )(ctrs_f, feats_f, wq_p, wkv_p)

    # Metadata-only reshape back to the module's [B, N, dim_v] layout.
    return out.reshape(B, N, dim_v)


def _init_linear_weight(key, dim_in, dim_out):
    # PyTorch nn.Linear default: U(-1/sqrt(fan_in), 1/sqrt(fan_in)); weight is
    # [out, in] applied as x @ W^T — stored pre-transposed as [in, out].
    bound = 1.0 / math.sqrt(dim_in)
    w = jax.random.uniform(key, (dim_out, dim_in), jnp.float32,
                           minval=-bound, maxval=bound)
    return w.T


if __name__ == "__main__":
    # Small shapes; feature widths match the module's native 128-wide Linears,
    # so the output slab is naturally lane-dense.
    B, N = 4, 8            # batch of lane graphs, nodes per graph
    dim_in = 128
    dim_k = 128
    dim_v = 128

    root = jax.random.PRNGKey(0)
    k_q, k_k, k_v, k_ctrs, k_feats = jax.random.split(root, 5)

    # Deterministic parameter init (l_q, l_k, l_v — bias-free).
    w_q = _init_linear_weight(k_q, dim_in, dim_k)
    w_k = _init_linear_weight(k_k, dim_in, dim_k)
    w_v = _init_linear_weight(k_v, dim_in, dim_v)

    # Example graph inputs: graph['ctrs'] -> q, graph['feats'] -> k, v.
    ctrs = jax.random.normal(k_ctrs, (B, N, dim_in), jnp.float32)
    feats = jax.random.normal(k_feats, (B, N, dim_in), jnp.float32)

    att = sparse_lane_attention(ctrs, feats, w_q, w_k, w_v)
    att = jax.block_until_ready(att)

    # Pure-JAX f32 reference for the same hot path.
    qr = jnp.einsum("bnd,de->bne", ctrs, w_q)
    kr = jnp.einsum("bnd,de->bne", feats, w_k)
    vr = jnp.einsum("bnd,de->bne", feats, w_v)
    energy = jnp.einsum("bqe,bke->bqk", qr, kr) * (1.0 / math.sqrt(dim_k))
    scores = jax.nn.softmax(energy, axis=-1)
    ref = jnp.einsum("bqk,bke->bqe", scores, vr)

    assert att.shape == (B, N, dim_v)
    # bf16 MXU operands (activations + weights) -> relaxed tolerance vs f32 ref.
    assert jnp.allclose(att, ref, atol=5e-2, rtol=5e-2), "mismatch vs reference"

    print("KERNEL_OK")
</pallas_src>

<mosaic_0001>
module attributes {stable_mosaic.version = 11 : i64} {
  func.func @_attention_kernel(%arg0: i32, %arg1: memref<16x128xbf16, #tpu.memory_space<vmem>>, %arg2: memref<16x128xbf16, #tpu.memory_space<vmem>>, %arg3: memref<128x128xbf16, #tpu.memory_space<vmem>>, %arg4: memref<128x256xbf16, #tpu.memory_space<vmem>>, %arg5: memref<16x128xf32, #tpu.memory_space<vmem>>) attributes {dimension_semantics = [#tpu.dimension_semantics<parallel>], iteration_bounds = array<i64: 2>, scalar_prefetch = 0 : i64, scratch_operands = 0 : i64, tpu.core_type = #tpu.core_type<tc>, window_params = [{transform_indices = @transform_0, window_bounds = array<i64: 16, 128>}, {transform_indices = @transform_1, window_bounds = array<i64: 16, 128>}, {pipeline_mode = #tpu.pipeline_mode<synchronous>, transform_indices = @transform_2, window_bounds = array<i64: 128, 128>}, {pipeline_mode = #tpu.pipeline_mode<synchronous>, transform_indices = @transform_3, window_bounds = array<i64: 128, 256>}, {transform_indices = @transform_4, window_bounds = array<i64: 16, 128>}]} {
    %c0 = arith.constant 0 : index
    %c0_0 = arith.constant 0 : index
    %0 = vector.load %arg1[%c0, %c0_0] : memref<16x128xbf16, #tpu.memory_space<vmem>>, vector<16x128xbf16>
    %c0_1 = arith.constant 0 : index
    %c0_2 = arith.constant 0 : index
    %1 = vector.load %arg3[%c0_1, %c0_2] : memref<128x128xbf16, #tpu.memory_space<vmem>>, vector<128x128xbf16>
    %cst = arith.constant dense<0.000000e+00> : vector<16x128xf32>
    %2 = tpu.matmul %0, %1, %cst {dimension_numbers = #tpu.dot_dimension_numbers<[1], [0], [0], [1], [0, 0, 1, 1], [], []>} : vector<16x128xbf16>, vector<128x128xbf16>, vector<16x128xf32> -> vector<16x128xf32>
    %c0_3 = arith.constant 0 : index
    %c0_4 = arith.constant 0 : index
    %3 = vector.load %arg2[%c0_3, %c0_4] : memref<16x128xbf16, #tpu.memory_space<vmem>>, vector<16x128xbf16>
    %c0_5 = arith.constant 0 : index
    %c0_6 = arith.constant 0 : index
    %4 = vector.load %arg4[%c0_5, %c0_6] : memref<128x256xbf16, #tpu.memory_space<vmem>>, vector<128x256xbf16>
    %cst_7 = arith.constant dense<0.000000e+00> : vector<16x256xf32>
    %5 = tpu.matmul %3, %4, %cst_7 {dimension_numbers = #tpu.dot_dimension_numbers<[1], [0], [0], [1], [0, 0, 1, 1], [], []>} : vector<16x128xbf16>, vector<128x256xbf16>, vector<16x256xf32> -> vector<16x256xf32>
    %6 = vector.shape_cast %2 : vector<16x128xf32> to vector<2x8x128xf32>
    %7 = arith.truncf %6 : vector<2x8x128xf32> to vector<2x8x128xbf16>
    %8 = vector.extract_strided_slice %5 {offsets = [0, 0], sizes = [16, 128], strides = [1, 1]} : vector<16x256xf32> to vector<16x128xf32>
    %9 = vector.shape_cast %8 : vector<16x128xf32> to vector<2x8x128xf32>
    %10 = arith.truncf %9 : vector<2x8x128xf32> to vector<2x8x128xbf16>
    %11 = vector.extract_strided_slice %5 {offsets = [0, 128], sizes = [16, 128], strides = [1, 1]} : vector<16x256xf32> to vector<16x128xf32>
    %12 = vector.shape_cast %11 : vector<16x128xf32> to vector<2x8x128xf32>
    %13 = arith.truncf %12 : vector<2x8x128xf32> to vector<2x8x128xbf16>
    "tpu.trace_start"() <{level = 10 : i32, message = "bqe,bke->bqk"}> : () -> ()
    %cst_8 = arith.constant dense<0.000000e+00> : vector<2x8x8xf32>
    %14 = tpu.matmul %7, %10, %cst_8 {dimension_numbers = #tpu.dot_dimension_numbers<[2], [2], [1], [1], [0, 0, 0, 1, 1, 1], [0], [0]>} : vector<2x8x128xbf16>, vector<2x8x128xbf16>, vector<2x8x8xf32> -> vector<2x8x8xf32>
    "tpu.trace_stop"() : () -> ()
    %cst_9 = arith.constant dense<0xFF800000> : vector<2x8xf32>
    %15 = vector.multi_reduction <maximumf>, %14, %cst_9 [2] : vector<2x8x8xf32> to vector<2x8xf32>
    %16 = vector.shape_cast %15 : vector<2x8xf32> to vector<2x8x1xf32>
    %17 = vector.broadcast %16 : vector<2x8x1xf32> to vector<2x8x8xf32>
    %18 = arith.subf %14, %17 : vector<2x8x8xf32>
    %19 = math.exp %18 : vector<2x8x8xf32>
    %cst_10 = arith.constant dense<0.000000e+00> : vector<2x8xf32>
    %20 = vector.multi_reduction <add>, %19, %cst_10 [2] : vector<2x8x8xf32> to vector<2x8xf32>
    %21 = vector.shape_cast %20 : vector<2x8xf32> to vector<2x8x1xf32>
    %22 = arith.truncf %19 : vector<2x8x8xf32> to vector<2x8x8xbf16>
    "tpu.trace_start"() <{level = 10 : i32, message = "bqk,bke->bqe"}> : () -> ()
    %cst_11 = arith.constant dense<0.000000e+00> : vector<2x8x128xf32>
    %23 = tpu.matmul %22, %13, %cst_11 {dimension_numbers = #tpu.dot_dimension_numbers<[2], [1], [1], [2], [0, 0, 0, 1, 1, 2], [0], [0]>} : vector<2x8x8xbf16>, vector<2x8x128xbf16>, vector<2x8x128xf32> -> vector<2x8x128xf32>
    "tpu.trace_stop"() : () -> ()
    %24 = vector.broadcast %21 : vector<2x8x1xf32> to vector<2x8x128xf32>
    %25 = arith.divf %23, %24 : vector<2x8x128xf32>
    %26 = vector.shape_cast %25 : vector<2x8x128xf32> to vector<16x128xf32>
    %c0_12 = arith.constant 0 : index
    %c0_13 = arith.constant 0 : index
    %27 = vector.load %arg5[%c0_12, %c0_13] : memref<16x128xf32, #tpu.memory_space<vmem>>, vector<16x128xf32>
    tpu.vector_store %arg5[%c0_12, %c0_13], %26 {strides = array<i32>} : memref<16x128xf32, #tpu.memory_space<vmem>>, vector<16x128xf32>,
    return
  }
  func.func @transform_0(%arg0: i32) -> (i32, i32) {
    %c0_i32 = arith.constant 0 : i32
    %c0_i32_0 = arith.constant 0 : i32
    return %arg0, %c0_i32 : i32, i32
  }
  func.func @transform_1(%arg0: i32) -> (i32, i32) {
    %c0_i32 = arith.constant 0 : i32
    %c0_i32_0 = arith.constant 0 : i32
    return %arg0, %c0_i32 : i32, i32
  }
  func.func @transform_2(%arg0: i32) -> (i32, i32) {
    %c0_i32 = arith.constant 0 : i32
    %c0_i32_0 = arith.constant 0 : i32
    %c0_i32_1 = arith.constant 0 : i32
    return %c0_i32, %c0_i32_0 : i32, i32
  }
  func.func @transform_3(%arg0: i32) -> (i32, i32) {
    %c0_i32 = arith.constant 0 : i32
    %c0_i32_0 = arith.constant 0 : i32
    %c0_i32_1 = arith.constant 0 : i32
    return %c0_i32, %c0_i32_0 : i32, i32
  }
  func.func @transform_4(%arg0: i32) -> (i32, i32) {
    %c0_i32 = arith.constant 0 : i32
    %c0_i32_0 = arith.constant 0 : i32
    return %arg0, %c0_i32 : i32, i32
  }
}

</mosaic_0001>

<bundles_post_ra>
// kernel: tpu_custom_call.1
= control target key start
LH: loop header
LB: loop body
LE: loop exit
PB: predicated region body
PF: predicated region fallthrough
CT: control target
= control target key end

     0   :  { %s1626_s0 = inlined_call_operand.hbm [shape: bf16[32,128], index: 0, kind: input, shape index: {}]   ;;  %s1627_s1 = inlined_call_operand.hbm [shape: bf16[32,128], index: 1, kind: input, shape index: {}]   ;;  %s1628_s2 = inlined_call_operand.hbm [shape: bf16[128,128], index: 2, kind: input, shape index: {}]   ;;  %s1629_s3 = inlined_call_operand.hbm [shape: bf16[128,256], index: 3, kind: input, shape index: {}]   ;;  %s1630_s4 = inlined_call_operand.hbm [shape: f32[32,128], index: 4, kind: output, shape index: {}]  }
   0x1   :  { %1638 = sst [smem:[#allocation16_spill]] %s1626_s0 }
   0x2   :  { %9 = vsyncpa [#allocation3], 0 }
   0x3   :  { %11 = vsyncpa [#allocation3 + $0x1], 0 }
   0x4   :  { %12 = vsyncpa [#allocation6], 0 }
   0x5   :  { %14 = vsyncpa [#allocation6 + $0x1], 0 }
   0x6   :  { %15 = vsyncpa [#allocation9], 0 }
   0x7   :  { %16 = vsyncpa [#allocation4], 0 }
   0x8   :  { %18 = vsyncpa [#allocation4 + $0x1], 0  ;;  %s1346_s15 = smov 0   ;;  %s1348_s16 = smov 0  }
   0x9   :  { %s1350_s17 = smov 0   ;;  %s1352_s18 = smov 0  }
   0xa LB: > { %s1367_s19 = sadd.s32 4294967295, %s1305_s18   ;;  %s884_s20 = sadd.s32 4294967294, %s1305_s18   ;;  %s1305_s18 = sphi %s1352_s18, %s1659_s18   ;;  %s1301_s17 = sphi %s1350_s17, %s1658_s17   ;;  %s1297_s16 = sphi %s1348_s16, %s1657_s16   ;;  %s1293_s15 = sphi %s1346_s15, %s1656_s15  }
   0xb   : > { %p44_p0 = scmp.ne.s32.totalorder %s1297_s16, %s1293_s15  ;;  %p1635_p1 = scmp.eq.s32.totalorder %s1367_s19, 0 }
   0xc   : > { %p136_p2 = scmp.eq.s32.totalorder %s1367_s19, 1  ;;  %p142_p3 = scmp.eq.s32.totalorder %s884_s20, 1 }
   0xd   : > { %p1376_p4 = por %p1635_p1, %p44_p0  ;;  %p885_p5 = scmp.ge.s32.totalorder %s1305_s18, 1 }
   0xe   : > { %p1381_p6 = por %p142_p3, %p44_p0  ;;  %p149_p7 = scmp.lt.s32.totalorder %s1305_s18, 3 }
   0xf   : > { %s1639_s21 = scalar_select %p1376_p4, 1, 0 }
  0x10   : > { %s1640_s22 = scalar_select %p1381_p6, 1, 0 }
  0x11   : > { %p1386_p8 = pnand %p885_p5, %p149_p7  ;;  %s1307_s24 = smov [#allocation7]  }
  0x12   : > { %s161_s25 = sshll.u32 %s1307_s24, 4  ;;  %s1308_s27 = smov [#allocation8]   ;;  %s162_s25 = int_to_ptr.vmem [resolvable:$true] %s161_s25 }
  0x13   : > { %p1012_p9 = pneg %p1386_p8  ;;  %s174_s28 = sshll.u32 %s1308_s27, 4  ;;  %s175_s28 = int_to_ptr.vmem [resolvable:$true] %s174_s28 }
  0x14   : > { %s1132_s29 = scalar_lea.vmem %s162_s25, 1024  ;;  %p1140_p5 = scmp.lt.s32.totalorder %s162_s25, %s162_s25 }
  0x15   : > { %p1395_p11 = pnand %p1012_p9, %p1635_p1  ;;  %p1133_p13 = scmp.ne.s32.totalorder %s162_s25, %s1132_s29 }
  0x16   : > { %p1141_p7 = scmp.lt.s32.totalorder %s1132_s29, %s1132_s29 }
  0x17   : > { %p1123_p12 = pneg %p1395_p11 }
  0x18   : > { %p1142_p10 = por %p1141_p7, %p1140_p5 }
  0x19   : > { %p1135_p0 = pnand %p1133_p13, %p1123_p12 }
  0x1b   : > { %p1136_p3 = pneg %p1135_p0 }
  0x1d   : > { %p1143_p9 = pnand %p1142_p10, %p1136_p3 }
  0x1f   : > { %1146 = shalt.err (!%p1143_p9)
}
  0x20   : > { %s1631_s30 = smov 64   ;;  %s1633_s5 = smov 4  }
  0x21   : > { %1015 = dma.hbm_to_vmem [thread:$0]  (!%p1395_p11), %s1628_s2, 1024, %s162_s25, [#allocation6], %s1631_s30, %s1631_s30, %s1633_s5  }
  0x22   : > { %s1158_s8 = scalar_lea.vmem %s175_s28, 2048  ;;  %p1166_p10 = scmp.lt.s32.totalorder %s175_s28, %s175_s28 }
  0x23   : > { %p1159_p13 = scmp.ne.s32.totalorder %s175_s28, %s1158_s8  ;;  %p1167_p3 = scmp.lt.s32.totalorder %s1158_s8, %s1158_s8 }
  0x25   : > { %p1161_p0 = pnand %p1159_p13, %p1123_p12  ;;  %p1168_p7 = por %p1167_p3, %p1166_p10 }
  0x27   : > { %p1162_p5 = pneg %p1161_p0 }
  0x29   : > { %p1169_p9 = pnand %p1168_p7, %p1162_p5 }
  0x2b   : > { %1172 = shalt.err (!%p1169_p9)
}
  0x2c   : > { %s1311_s9 = smov 128   ;;  %s1312_s10 = smov 8  }
  0x2d   : > { %1018 = dma.hbm_to_vmem [thread:$0]  (!%p1395_p11), %s1629_s3, 2048, %s175_s28, [#allocation9], %s1311_s9, %s1311_s9, %s1312_s10  }
  0x2e   : > { %s1421_s13 = sadd.s32 1, %s1305_s18   ;;  %s31_s20 = sadd.s32 1, %s1301_s17 }
  0x2f   : > { %s28_s14 = ssub.s32 %s1305_s18, %s1421_s13  ;;  %p38_p13 = scmp.ne.s32.totalorder %s1301_s17, %s1297_s16 }
  0x30   : > { %p29_p12 = scmp.eq.s32.totalorder %s28_s14, 0  ;;  %p39_p0 = scmp.eq.s32.totalorder %s1305_s18, 0 }
  0x31   : > { %p1434_p10 = por %p136_p2, %p38_p13  ;;  %p1032_p3 = scmp.lt.s32.totalorder %s1305_s18, 2 }
  0x32   : > { %s1430_s24 = scalar_select %p29_p12, %s1301_s17, %s31_s20  }
  0x33   : > { %p40_p5 = por %p39_p0, %p38_p13  ;;  %s188_s26 = sand.u32 1, %s1301_s17  }
  0x34   : > { %s1643_s25 = scalar_select %p1434_p10, 1, 0 }
  0x35   : > { %s889_s27 = sshll.u32 %s188_s26, 3  ;;  %s934_s28 = sshll.u32 %s1305_s18, 7 }
  0x36   : > { %s1644_s0 = sld [smem:[#allocation16_spill]]  ;;  %s192_s8 = scalar_lea.vmem [#allocation2], %s889_s27 }
  0x37   : > { %s199_s9 = sshll.u32 %s192_s8, 4  ;;  %p1448_p2 = pnand %p1032_p3, %p40_p5  ;;  %s1446_s9 = int_to_ptr.vmem [resolvable:$true] %s199_s9 }
  0x38   : > { %s1455_s14 = scalar_lea.hbm %s1627_s1, %s934_s28  ;;  %s213_s20 = scalar_lea.vmem [#allocation5], %s889_s27 }
  0x39   : > { %s1457_s29 = sshll.u32 %s213_s20, 4  ;;  %s1459_s6 = scalar_lea.sflag [#allocation3], %s188_s26  ;;  %s1490_s29 = int_to_ptr.vmem [resolvable:$true] %s1457_s29 }
  0x3a   : > { %p1175_p7 = pneg %p1448_p2 }
  0x3c   : > { %s1444_s7 = scalar_lea.hbm %s1644_s0, %s934_s28  ;;  %s1178_s11 = scalar_lea.hbm %s1644_s0, 256 }
  0x3d   : > { %s1173_s30 = scalar_lea.hbm %s1444_s7, 128  ;;  %p1179_p13 = scmp.lt.s32.totalorder %s1444_s7, %s1644_s0 }
  0x3e   : > { %p1174_p11 = scmp.ne.s32.totalorder %s1444_s7, %s1173_s30  ;;  %p1180_p0 = scmp.lt.s32.totalorder %s1178_s11, %s1173_s30 }
  0x40   : > { %p1176_p9 = pnand %p1175_p7, %p1174_p11  ;;  %p1181_p5 = por %p1180_p0, %p1179_p13 }
  0x42   : > { %p1177_p12 = pneg %p1176_p9 }
  0x44   : > { %p1182_p3 = pnand %p1181_p5, %p1177_p12 }
  0x46   : > { %1185 = shalt.err (!%p1182_p3)
}
  0x47   : > { %s1186_s26 = scalar_lea.vmem %s1446_s9, 128  ;;  %s1313_s5 = smov [#allocation2]  }
  0x48   : > { %p1187_p1 = scmp.ne.s32.totalorder %s1446_s9, %s1186_s26  ;;  %s1191_s27 = sshll.u32 %s1313_s5, 4  ;;  %s1192_s27 = int_to_ptr.vmem [resolvable:$false] %s1191_s27 }
  0x49   : > { %s1193_s20 = scalar_lea.vmem %s1192_s27, 256  ;;  %p1194_p6 = scmp.lt.s32.totalorder %s1446_s9, %s1192_s27 }
  0x4a   : > { %p1189_p11 = pnand %p1187_p1, %p1175_p7  ;;  %p1195_p10 = scmp.lt.s32.totalorder %s1193_s20, %s1186_s26 }
  0x4c   : > { %p1190_p9 = pneg %p1189_p11  ;;  %p1196_p4 = por %p1195_p10, %p1194_p6 }
  0x4e   : > { %p1197_p13 = pnand %p1196_p4, %p1190_p9 }
  0x50   : > { %1200 = shalt.err (!%p1197_p13)
}
  0x51   : > { %s1646_s30 = smov 4   ;;  %s1647_s8 = smov 64  }
  0x52   : > { %1022 = dma.hbm_to_vmem [thread:$0]  (!%p1448_p2), %s1444_s7, 128, %s1446_s9, %s1459_s6, %s1647_s8, %s1647_s8, %s1646_s30  }
  0x53   : > { %s209_s11 = sand.u32 1, %s1305_s18   ;;  %s1201_s28 = scalar_lea.hbm %s1455_s14, 128 }
  0x54   : > { %s210_s12 = scalar_lea.sflag [#allocation6], %s209_s11  ;;  %p1202_p1 = scmp.ne.s32.totalorder %s1455_s14, %s1201_s28 }
  0x55   : > { %s1206_s27 = scalar_lea.hbm %s1627_s1, 256  ;;  %p1207_p10 = scmp.lt.s32.totalorder %s1455_s14, %s1627_s1 }
  0x56   : > { %p1204_p4 = pnand %p1202_p1, %p1175_p7  ;;  %p1208_p12 = scmp.lt.s32.totalorder %s1206_s27, %s1201_s28 }
  0x58   : > { %p1205_p6 = pneg %p1204_p4  ;;  %p1209_p0 = por %p1208_p12, %p1207_p10 }
  0x5a   : > { %p1210_p5 = pnand %p1209_p0, %p1205_p6 }
  0x5c   : > { %1213 = shalt.err (!%p1210_p5)
}
  0x5d   : > { %s1214_s7 = scalar_lea.vmem %s1490_s29, 128  ;;  %s1314_s9 = smov [#allocation5]  }
  0x5e   : > { %p1215_p3 = scmp.ne.s32.totalorder %s1490_s29, %s1214_s7  ;;  %s1219_s6 = sshll.u32 %s1314_s9, 4  ;;  %s1220_s6 = int_to_ptr.vmem [resolvable:$false] %s1219_s6 }
  0x5f   : > { %s1221_s11 = scalar_lea.vmem %s1220_s6, 256  ;;  %p1222_p13 = scmp.lt.s32.totalorder %s1490_s29, %s1220_s6 }
  0x60   : > { %p1217_p11 = pnand %p1215_p3, %p1175_p7  ;;  %p1223_p1 = scmp.lt.s32.totalorder %s1221_s11, %s1214_s7 }
  0x62   : > { %p1218_p9 = pneg %p1217_p11  ;;  %p1224_p4 = por %p1223_p1, %p1222_p13 }
  0x64   : > { %p1225_p10 = pnand %p1224_p4, %p1218_p9 }
  0x66   : > { %1228 = shalt.err (!%p1225_p10)
}
  0x67   : > { %1025 = dma.hbm_to_vmem [thread:$0]  (!%p1448_p2), %s1455_s14, 128, %s1490_s29, %s210_s12, %s1647_s8, %s1647_s8, %s1646_s30  }
  0x68   : > { %232 = sbr.rel (%p1386_p8) target bundleno = 922 (0x39a), region = 36  ;;  %s1521_s0 = sand.u32 (!%p1386_p8), 1, %s1297_s16  }
  0x69   : > { %s896_s28 = sshll.u32 (!%p1386_p8), %s1521_s0, 3  ;;  %s235_s26 = scalar_lea.sflag (!%p1386_p8), [#allocation3], %s1521_s0 }
  0x6a   : > { %s1525_s5 = scalar_lea.vmem (!%p1386_p8), [#allocation2], %s896_s28  ;;  %p1648_p7 = scmp.ne.s32.totalorder (!%p1386_p8), %s1639_s21, 0 }
  0x6d   : > { %1272 = dma.done.wait (%p1648_p7), %s235_s26, 128  }
  0x6e   : > { %1274 = vsyncadd (%p1648_p7), %s235_s26, 4294967168  ;;  %s243_s10 = sand.u32 1, %s1367_s19   ;;  %s1532_s14 = scalar_lea.vmem [#allocation5], %s896_s28 }
  0x6f   : > { %s244_s23 = scalar_lea.sflag [#allocation6], %s243_s10 }
  0x70   : > { %1276 = dma.done.wait (%p1648_p7), %s244_s23, 128  }
  0x71   : > { %1278 = vsyncadd (%p1648_p7), %s244_s23, 4294967168  ;;  %p1649_p8 = scmp.eq.s32.totalorder %s1367_s19, 0 }
  0x73   : > { %1280 = dma.done.wait (%p1649_p8), [#allocation6], 1024   ;;  %p1650_p2 = pmov %p1649_p8 }
  0x75   : > { %1282 = vsyncadd (%p1650_p2), [#allocation6], 4294966272  ;;  %p1651_p6 = pmov %p1650_p2 }
  0x76   : > { %p1652_p12 = pmov %p1650_p2 }
  0x77   : > { %1284 = dma.done.wait (%p1651_p6), [#allocation9], 2048  }
  0x78   : > { %1286 = vsyncadd (%p1652_p12), [#allocation9], 4294965248  ;;  %v1315_v0 = vmov 0.0   ;;  %v1316_v1 = vmov 0   ;;  %vm1317_vm0 = vmmov 0   ;;  %v1082_v4 = vld [vmem:[#allocation7 + $0x38] sm:$0xff]  }
  0x79   : > { %954 = vmatprep.subr.bf16.mxu0 %v1315_v0  ;;  %538 = vmatprep.mubr.bf16.mxu1 %v1316_v1  ;;  %v1079_v2 = vld [vmem:[#allocation8 + $0x74] ss:$8 sps:$4 sm:$0xff]   ;;  %v1081_v3 = vld [vmem:[#allocation8 + $0x70] ss:$8 sps:$4 sm:$0xff]   ;;  %v1083_v5 = vld [vmem:[#allocation8 + $0x64] ss:$8 sps:$4 sm:$0xff]  }
  0x7a   : > { %970 = vmatprep.mubr.msk.bf16.mxu0 %vm1317_vm0, %v1315_v0  ;;  %506 = vmatprep.subr.bf16.mxu1 %v1079_v2  ;;  %v1085_v6 = vld [vmem:[#allocation8 + $0x60] ss:$8 sps:$4 sm:$0xff]   ;;  %v1086_v7 = vld [vmem:[#allocation7 + $0x30] sm:$0xff]   ;;  %v1091_v11 = vld [vmem:[#allocation8 + $0x44] ss:$8 sps:$4 sm:$0xff]   ;;  %vm659_vm1 = vcmask 1043456  }
  0x7b   : > { %507 = vmatpush1.bf16.msra.mxu1 %v1081_v3  ;;  %955 = vmatpush3.bf16.msra.mxu0 %v1082_v4  ;;  %v1087_v8 = vld [vmem:[#allocation8 + $0x54] ss:$8 sps:$4 sm:$0xff]   ;;  %v1089_v9 = vld [vmem:[#allocation8 + $0x50] ss:$8 sps:$4 sm:$0xff]   ;;  %v1090_v10 = vld [vmem:[#allocation7 + $0x28] sm:$0xff]   ;;  %vm635_vm2 = vcmask 64512  }
  0x7c   : > { %508 = vmatprep.subr.bf16.mxu1 %v1083_v5  ;;  %956 = vmatprep.subr.bf16.mxu0 %v1315_v0  ;;  %v1093_v12 = vld [vmem:[#allocation8 + $0x40] ss:$8 sps:$4 sm:$0xff]   ;;  %v1095_v14 = vld [vmem:[#allocation8 + $0x34] ss:$8 sps:$4 sm:$0xff]   ;;  %v1097_v15 = vld [vmem:[#allocation8 + $0x30] ss:$8 sps:$4 sm:$0xff]  }
  0x7d   : > { %v1094_v13 = vld [vmem:[#allocation7 + $0x20] sm:$0xff]   ;;  %v1098_v16 = vld [vmem:[#allocation7 + $0x18] sm:$0xff]   ;;  %v1102_v19 = vld [vmem:[#allocation7 + $0x10] sm:$0xff]   ;;  %s900_s21 = sshll.u32 %s1521_s0, 4  ;;  %s936_s8 = sshll.u32 %s1367_s19, 8 }
  0x7e   : > { %v1099_v17 = vld [vmem:[#allocation8 + $0x24] ss:$8 sps:$4 sm:$0xff]   ;;  %v1101_v18 = vld [vmem:[#allocation8 + $0x20] ss:$8 sps:$4 sm:$0xff]   ;;  %v1103_v20 = vld [vmem:[#allocation8 + $0x14] ss:$8 sps:$4 sm:$0xff]   ;;  %s1583_s20 = scalar_lea.hbm %s1630_s4, %s936_s8 }
  0x7f   : > { %509 = vmatpush1.bf16.msra.mxu1 %v1085_v6  ;;  %957 = vmatpush3.bf16.msra.mxu0 %v1086_v7  ;;  %v1105_v21 = vld [vmem:[#allocation8 + $0x10] ss:$8 sps:$4 sm:$0xff]   ;;  %v1106_v22 = vld [vmem:[#allocation7 + $0x8] sm:$0xff]   ;;  %v1110_v25 = vld [vmem:[#allocation7] sm:$0xff]   ;;  %s284_s29 = scalar_lea.vmem [#allocation10], %s900_s21  ;;  %s756_s19 = scalar_lea.sflag [#allocation4], %s1521_s0 }
  0x80   : > { %510 = vmatprep.subr.bf16.mxu1 %v1087_v8  ;;  %958 = vmatprep.subr.bf16.mxu0 %v1315_v0  ;;  %v1107_v23 = vld [vmem:[#allocation8 + $0x4] ss:$8 sps:$4 sm:$0xff]   ;;  %v1109_v24 = vld [vmem:[#allocation8] ss:$8 sps:$4 sm:$0xff]   ;;  %v1111_v26 = vld [vmem:[%s1532_s14] sm:$0xff]   ;;  %s769_s30 = sshll.u32 %s284_s29, 4  ;;  %s1578_s30 = int_to_ptr.vmem [resolvable:$true] %s769_s30 }
  0x81   : > { %v1112_v27 = vld [vmem:[%s1525_s5] sm:$0xff]   ;;  %s1229_s7 = scalar_lea.vmem %s1578_s30, 256  ;;  %p1653_p5 = scmp.ne.s32.totalorder %s1643_s25, 0 }
  0x82   : > { %p1230_p0 = scmp.ne.s32.totalorder %s1578_s30, %s1229_s7  ;;  %s1318_s9 = smov [#allocation10]  }
  0x83   : > { %511 = vmatpush1.bf16.msra.mxu1 %v1089_v9  ;;  %959 = vmatpush3.bf16.msra.mxu0 %v1090_v10  ;;  %s1233_s6 = sshll.u32 %s1318_s9, 4  ;;  %s1234_s6 = int_to_ptr.vmem [resolvable:$false] %s1233_s6 }
  0x84   : > { %512 = vmatprep.subr.bf16.mxu1 %v1091_v11  ;;  %960 = vmatprep.subr.bf16.mxu0 %v1315_v0  ;;  %p1231_p3 = pnand %p1230_p0, %p1653_p5  ;;  %s1235_s11 = scalar_lea.vmem %s1234_s6, 512 }
  0x85   : > { %p1236_p9 = scmp.lt.s32.totalorder %s1578_s30, %s1234_s6  ;;  %p1237_p13 = scmp.lt.s32.totalorder %s1235_s11, %s1229_s7 }
  0x86   : > { %p1232_p11 = pneg %p1231_p3 }
  0x87   : > { %513 = vmatpush1.bf16.msra.mxu1 %v1093_v12  ;;  %961 = vmatpush3.bf16.msra.mxu0 %v1094_v13  ;;  %p1238_p1 = por %p1237_p13, %p1236_p9 }
  0x88   : > { %514 = vmatprep.subr.bf16.mxu1 %v1095_v14  ;;  %962 = vmatprep.subr.bf16.mxu0 %v1315_v0 }
  0x89   : > { %p1239_p4 = pnand %p1238_p1, %p1232_p11 }
  0x8b   : > { %515 = vmatpush1.bf16.msra.mxu1 %v1097_v15  ;;  %963 = vmatpush3.bf16.msra.mxu0 %v1098_v16 }
  0x8c   : > { %516 = vmatprep.subr.bf16.mxu1 %v1099_v17  ;;  %964 = vmatprep.subr.bf16.mxu0 %v1315_v0 }
  0x8f   : > { %517 = vmatpush1.bf16.msra.mxu1 %v1101_v18  ;;  %965 = vmatpush3.bf16.msra.mxu0 %v1102_v19 }
  0x90   : > { %518 = vmatprep.subr.bf16.mxu1 %v1103_v20  ;;  %966 = vmatprep.subr.bf16.mxu0 %v1315_v0 }
  0x93   : > { %519 = vmatpush1.bf16.msra.mxu1 %v1105_v21  ;;  %967 = vmatpush3.bf16.msra.mxu0 %v1106_v22 }
  0x94   : > { %520 = vmatprep.subr.bf16.mxu1 %v1107_v23  ;;  %968 = vmatprep.subr.bf16.mxu0 %v1315_v0 }
  0x97   : > { %521 = vmatpush1.bf16.msra.mxu1 %v1109_v24  ;;  %969 = vmatpush3.bf16.msra.mxu0 %v1110_v25 }
  0x98   : > { %980 = vmatprep.subr.bf16.mxu1 %v1315_v0  ;;  %974 = vmatprep.subr.bf16.mxu0 %v1315_v0 }
  0x9a   : > { %539 = vmatmul.mubr.bf16.vlgmr.msra.gmra.mxu1 %v1111_v26  ;;  %971 = vmatmul.mubr.bf16.vlgmr.msra.gmra.mxu0 %v1112_v27 }
  0x9b   : > { %982 = vmatprep.mubr.msk.bf16.mxu1 %vm1317_vm0, %v1315_v0  ;;  %976 = vmatprep.mubr.msk.bf16.mxu0 %vm1317_vm0, %v1315_v0 }
 0x15a   : > { %v540_v28 = vpop.f32.mrf.mxu1  ;;  %v395_v30 = vpop.f32.mrf.mxu0 }
 0x15b   : > { %v551_v29 = vpack.c.bf16 %v540_v28, %v540_v28  ;;  %v549_v36 = vpack.c.bf16 %v395_v30, %v395_v30 }
 0x15c   : > { %v542_v31 = vpop.f32.mrf.mxu1  ;;  %v972_v32 = vpop.f32.mrf.mxu0 }
 0x15d   : > { %975 = vmatpush3.bf16.xpose.msra.mxu0 %v551_v29  ;;  %v553_v37 = vpack.c.bf16 %v542_v31, %v542_v31 }
 0x15e   : > { %v544_v33 = vpop.f32.mrf.mxu1  ;;  %986 = vmatprep.subr.bf16.mxu0 %v1315_v0  ;;  %v398_v35 = vpop.f32.mrf.mxu0 }
 0x15f   : > { %v552_v34 = vpack.c.bf16 %v544_v33, %v544_v33  ;;  %v661_v40 = vsel %vm659_vm1, %v553_v37, 0  ;;  %v550_v42 = vpack.c.bf16 %v398_v35, %v398_v35 }
 0x160   : > { %v546_v38 = vpop.f32.mrf.mxu1  ;;  %v973_v39 = vpop.f32.mrf.mxu0 }
 0x161   : > { %981 = vmatpush3.bf16.xpose.msra.mxu1 %v552_v34  ;;  %v554_v41 = vpack.c.bf16 %v546_v38, %v546_v38 }
 0x162   : > { %992 = vmatprep.subr.bf16.mxu1 %v1315_v0 }
 0x163   : > { %v707_v43 = vsel %vm659_vm1, %v554_v41, 0 }
 0x164   : > { %977 = vmatmul.mubr.bf16.vlgmr.msra.gmra.mxu0 %v549_v36 }
 0x165   : > { %987 = vmatpush3.bf16.msra.mxu0 %v661_v40  ;;  %988 = vmatprep.mubr.msk.bf16.mxu0 %vm1317_vm0, %v1315_v0 }
 0x168   : > { %983 = vmatmul.mubr.bf16.vlgmr.msra.gmra.mxu1 %v550_v42 }
 0x169   : > { %993 = vmatpush3.bf16.msra.mxu1 %v707_v43  ;;  %994 = vmatprep.mubr.msk.bf16.mxu1 %vm1317_vm0, %v1315_v0 }
 0x224   : > { %v589_v44 = vpop.f32.mrf.mxu0 }
 0x225   : > { %v636_v45 = vsel %vm635_vm2, %v589_v44, -inf }
 0x226   : > { %637 = vmax.xlane.f32.xlu0 %v636_v45  ;;  %v978_v46 = vpop.f32.mrf.mxu0 }
 0x228   : > { %v592_v47 = vpop.f32.mrf.mxu0  ;;  %v629_v48 = vpop.f32.mrf.mxu1 }
 0x229   : > { %v639_v49 = vsel %vm635_vm2, %v629_v48, -inf }
 0x22a   : > { %v984_v50 = vpop.f32.mrf.mxu1  ;;  %640 = vmax.xlane.f32.xlu0 %v639_v49  ;;  %v979_v51 = vpop.f32.mrf.mxu0 }
 0x22c   : > { %v632_v52 = vpop.f32.mrf.mxu1 }
 0x22e   : > { %v985_v53 = vpop.f32.mrf.mxu1 }
 0x2af   : > { %v638_v54 = vpop.xlane.xlu0 %637 }
 0x2b0   : > { %v642_v55 = vsub.f32 %v589_v44, %v638_v54 }
 0x2b2   : > { %v644_v56 = vmul.f32 1.442695, %v642_v55 }
 0x2b3   : > { %v641_v57 = vpop.xlane.xlu0 %640 }
 0x2b4   : > { %1113 = vpow2.f32 %v644_v56  ;;  %v643_v58 = vsub.f32 %v629_v48, %v641_v57 }
 0x2b6   : > { %v646_v59 = vmul.f32 1.442695, %v643_v58 }
 0x2b8   : > { %1115 = vpow2.f32 %v646_v59 }
 0x2c1   : > { %v1114_v60 = vpop.eup %1113 }
 0x2c2   : > { %v648_v61 = vsel %vm635_vm2, %v1114_v60, 0.0  ;;  %v654_v62 = vpack.c.bf16 %v1114_v60, %v1114_v60 }
 0x2c3   : > { %649 = vadd.xlane.f32.xlu1 %v648_v61 }
 0x2c4   : > { %989 = vmatmul.mubr.msk.bf16.vlgmr.msra.gmra.mxu0 %vm635_vm2, %v654_v62 }
 0x2c5   : > { %v1116_v63 = vpop.eup %1115 }
 0x2c6   : > { %v651_v0 = vsel %vm635_vm2, %v1116_v63, 0.0  ;;  %v655_v1 = vpack.c.bf16 %v1116_v63, %v1116_v63 }
 0x2c7   : > { %652 = vadd.xlane.f32.xlu1 %v651_v0 }
 0x2c8   : > { %995 = vmatmul.mubr.msk.bf16.vlgmr.msra.gmra.mxu1 %vm635_vm2, %v655_v1 }
 0x34c   : > { %v650_v2 = vpop.xlane.xlu1 %649 }
 0x34d   : > { %1117 = vrcp.f32 %v650_v2 }
 0x350   : > { %v653_v3 = vpop.xlane.xlu1 %652 }
 0x351   : > { %1119 = vrcp.f32 %v653_v3 }
 0x35a   : > { %v1118_v4 = vpop.eup %1117 }
 0x35e   : > { %v1120_v8 = vpop.eup %1119 }
 0x384   : > { %v697_v5 = vpop.f32.mrf.mxu0 }
 0x385   : > { %v750_v6 = vmul.f32 %v1118_v4, %v697_v5 }
 0x386   : > { %v990_v7 = vpop.f32.mrf.mxu0 }
 0x387   : > { %753 = vst [vmem:[%s284_s29] sm:$0xff] %v750_v6 }
 0x388   : > { %v700_v9 = vpop.f32.mrf.mxu0  ;;  %v743_v10 = vpop.f32.mrf.mxu1 }
 0x389   : > { %v752_v11 = vmul.f32 %v1120_v8, %v743_v10 }
 0x38a   : > { %v991_v12 = vpop.f32.mrf.mxu0  ;;  %v996_v13 = vpop.f32.mrf.mxu1 }
 0x38b   : > { %754 = vst [vmem:[%s284_s29 + $0x8] sm:$0xff] %v752_v11 }
 0x38c   : > { %v746_v14 = vpop.f32.mrf.mxu1 }
 0x38d   : > { %1242 = shalt.err (!%p1239_p4)
}
 0x38e   : > { %s1243_s28 = scalar_lea.hbm %s1583_s20, 256  ;;  %s1247_s10 = scalar_lea.hbm %s1630_s4, 512 }
 0x38f   : > { %p1244_p10 = scmp.ne.s32.totalorder %s1583_s20, %s1243_s28  ;;  %p1248_p2 = scmp.lt.s32.totalorder %s1583_s20, %s1630_s4 }
 0x390   : > { %p1249_p6 = scmp.lt.s32.totalorder %s1247_s10, %s1243_s28 }
 0x391   : > { %p1245_p7 = pnand %p1244_p10, %p1653_p5 }
 0x392   : > { %p1250_p12 = por %p1249_p6, %p1248_p2 }
 0x393   : > { %p1246_p8 = pneg %p1245_p7 }
 0x395   : > { %p1251_p0 = pnand %p1250_p12, %p1246_p8 }
 0x397   : > { %1254 = shalt.err (!%p1251_p0)
}
 0x398   : > { %s1319_s21 = smov 128   ;;  %s1320_s29 = smov 8   ;;  %v997_v15 = vpop.f32.mrf.mxu1 }
 0x399   : > { %1010 = dma.vmem_to_hbm [thread:$0]  (%p1653_p5), %s1578_s30, 256, %s1583_s20, %s756_s19, %s1319_s21, %s1319_s21, %s1320_s29  }
 0x39a PF: > { %s784_s8 = sand.u32 1, %s1293_s15   ;;  %p1654_p3 = scmp.ne.s32.totalorder %s1640_s22, 0 }
 0x39b   : > { %p1655_p11 = scmp.ge.s32.totalorder %s1305_s18, 2  ;;  %s785_s12 = scalar_lea.sflag [#allocation4], %s784_s8 }
 0x39d   : > { %p1027_p9 = pnand %p1655_p11, %p1654_p3 }
 0x39f   : > { %p1028_p13 = pneg %p1027_p9 }
 0x3a1   : > { %1288 = dma.done.wait (%p1028_p13), %s785_s12, 256  }
 0x3a2   : > { %1290 = vsyncadd (%p1028_p13), %s785_s12, 4294967040  ;;  %p21_p1 = scmp.ge.s32.totalorder %s1421_s13, 4   ;;  %s1656_s15 = smov %s1297_s16 }
 0x3a3   : > { %s1657_s16 = smov %s1301_s17  ;;  %s1658_s17 = smov %s1430_s24 }
 0x3a4   : > { %s1659_s18 = smov %s1421_s13  ;;  %23 = sbr.rel (!%p21_p1) target bundleno = 10 (0xa), region = 102 }
 0x3a9   :  { %790 = vsyncpa [#allocation3], 1 }
 0x3aa   :  { %792 = vsyncpa [#allocation3 + $0x1], 1 }
 0x3ab   :  { %793 = vsyncpa [#allocation6], 1 }
 0x3ac   :  { %795 = vsyncpa [#allocation6 + $0x1], 1 }
 0x3ad   :  { %796 = vsyncpa [#allocation9], 1 }
 0x3ae   :  { %797 = vsyncpa [#allocation4], 1 }
 0x3af   :  { %799 = vsyncpa [#allocation4 + $0x1], 1 }

</bundles_post_ra>
